<compile_context>
chip_gen: v5e
topology: v5e:2x2
jax: 0.10.0
libtpu: 0.0.40
codegen_flags: <defaults>
</compile_context>

<pallas_src>
import jax
import jax.numpy as jnp
from jax.experimental import pallas as pl
from jax.experimental.pallas import tpu as pltpu

LANES = 128
OUT_PAD = LANES                     # layer-3 matmul width inside the kernel
OUT_COLS = 2                        # useful output lanes written back (q1, q2)
WEIGHT_DTYPE = jnp.bfloat16
VMEM_BUDGET = 24 * 1024 * 1024      # conservative: fits v7x's 32 MiB scoped default


def _round_up(x, m):
    return (x + m - 1) // m * m


# ----------------------------------------------------------------------------- kernel
def _make_value_net_kernel(fuse_w2: bool, half: int):
    """Fused twin-Q MLP: 3 MXU matmul passes, f32 accumulation, (tb, 2) store."""

    def kernel(state_ref, action_ref, w1_ref, b12_ref, w2_ref, w3_ref, b3_ref,
               out_ref):
        # ---- layer 1: ONE MXU pass over [state | action] --------------------
        # Both blocks are already in VMEM; the lane concat is a cheap XLU shift
        # and avoids issuing a second (half-empty) K-tile matmul.
        x = jnp.concatenate([state_ref[...], action_ref[...]], axis=1)
        h = jnp.dot(x.astype(WEIGHT_DTYPE), w1_ref[...],
                    preferred_element_type=jnp.float32)
        # bias + ReLU in f32 (v5e-safe VPU), one bf16 cast feeding the next dot.
        h = jnp.maximum(h + b12_ref[0:1, :], 0.0).astype(WEIGHT_DTYPE)

        # ---- layer 2 ---------------------------------------------------------
        if fuse_w2:
            # Small H: fused block-diagonal (hp, hp) matmul.
            h = jnp.dot(h, w2_ref[...], preferred_element_type=jnp.float32)
        else:
            # Large H: two per-head (half, half) matmuls on aligned lane halves.
            h = jnp.concatenate(
                [jnp.dot(h[:, :half], w2_ref[0],
                         preferred_element_type=jnp.float32),
                 jnp.dot(h[:, half:], w2_ref[1],
                         preferred_element_type=jnp.float32)],
                axis=1)
        h = jnp.maximum(h + b12_ref[1:2, :], 0.0).astype(WEIGHT_DTYPE)

        # ---- layer 3: 128-lane matmul, store only the 2 useful lanes ---------
        q = jnp.dot(h, w3_ref[...], preferred_element_type=jnp.float32) + b3_ref[...]
        out_ref[...] = q[:, :OUT_COLS]

    return kernel


# ----------------------------------------------------------------------------- wrapper
def value_network_forward(state, action, packed_params, *, batch_tile=2048):
    """state: (B, num_inputs), action: (B, num_actions) -> (q1, q2), each (B, 1)."""
    w1, b12, w2, w3, b3 = packed_params
    B, num_inputs = state.shape
    num_actions = action.shape[1]
    d_in = num_inputs + num_actions
    hp = w1.shape[1]                 # padded fused hidden width (multiple of 128)
    fuse_w2 = (w2.ndim == 2)         # block-diagonal fused vs per-head blocks
    half = hp // 2

    # ---- batch tile selection (generation-aware) -----------------------------
    weight_bytes = 2 * sum(int(p.size) * p.dtype.itemsize for p in packed_params)
    act_row_bytes = (2 * 4 * d_in              # state + action, double-buffered f32
                     + 4 * hp + 2 * 2 * hp     # f32 matmul result + 2 bf16 hiddens
                     + 2 * 4 * OUT_COLS)       # (tb, 2) f32 output, double-buffered
    if B <= 8:
        tb = B                                 # one tile; can't split below 8 rows
    else:
        # >= 2 grid steps so the "parallel" axis shards across v7x's 2 TensorCores.
        tb = min(batch_tile, _round_up(pl.cdiv(B, 2), 8))
        # Explicit VMEM bound (v7x: 64 MiB physical, 32 MiB scoped default).
        max_tb = max(8, ((VMEM_BUDGET - weight_bytes) // act_row_bytes) // 8 * 8)
        tb = max(8, min(tb, max_tb))
    grid = (pl.cdiv(B, tb),)

    vmem_estimate = weight_bytes + tb * act_row_bytes + (1 << 20)
    vmem_limit = int(min(48 * 1024 * 1024, max(32 * 1024 * 1024, 2 * vmem_estimate)))

    # ---- scheduler hints (updated for output shrink + layer-1 merge) ---------
    l2_flops = hp * hp if fuse_w2 else hp * half
    flops = 2 * B * (d_in * hp + l2_flops + hp * OUT_PAD)
    bytes_accessed = (int(state.size) * 4 + int(action.size) * 4
                      + sum(int(p.size) * p.dtype.itemsize for p in packed_params)
                      + B * OUT_COLS * 4)

    batch_map = lambda i: (i, 0)     # activations / output: tile over batch
    fixed2 = lambda i: (0, 0)        # weights / biases: same block every step
    fixed3 = lambda i: (0, 0, 0)

    kernel = _make_value_net_kernel(fuse_w2, half)

    def build_and_run(weight_buffering):
        wkw = {} if weight_buffering is None else {"pipeline_mode": weight_buffering}
        w2_spec = (pl.BlockSpec((hp, hp), fixed2, **wkw) if fuse_w2
                   else pl.BlockSpec((2, half, half), fixed3, **wkw))
        return pl.pallas_call(
            kernel,
            out_shape=jax.ShapeDtypeStruct((B, OUT_COLS), jnp.float32),
            grid=grid,
            in_specs=[
                pl.BlockSpec((tb, num_inputs), batch_map),
                pl.BlockSpec((tb, num_actions), batch_map),
                pl.BlockSpec((d_in, hp), fixed2, **wkw),
                pl.BlockSpec((2, hp), fixed2, **wkw),
                w2_spec,
                pl.BlockSpec((hp, OUT_PAD), fixed2, **wkw),
                pl.BlockSpec((1, OUT_PAD), fixed2, **wkw),
            ],
            out_specs=pl.BlockSpec((tb, OUT_COLS), batch_map),
            compiler_params=pltpu.CompilerParams(
                dimension_semantics=("parallel",),
                vmem_limit_bytes=vmem_limit),
            cost_estimate=pl.CostEstimate(
                flops=flops, transcendentals=0, bytes_accessed=bytes_accessed),
        )(state, action, w1, b12, w2, w3, b3)

    try:
        # Constant-index weight blocks are never re-DMA'd; single-buffering them
        # halves their resident VMEM (headroom for bigger batch tiles on v7x).
        out = build_and_run(pl.Buffered(1))
    except Exception:  # pragma: no cover — JAX build without pipeline_mode support
        out = build_and_run(None)

    q1 = out[:, 0:1]
    q2 = out[:, 1:2]
    return q1, q2


# ----------------------------------------------------------------------------- params
def init_raw_params(key, num_inputs, num_actions, hidden_size, init_w=0.003):
    """Per-head parameters in (in_features, out_features) layout (nn.Linear^T)."""
    d_in = num_inputs + num_actions
    keys = jax.random.split(key, 12)

    def linear(kw, kb, fan_in, fan_out, scale):
        w = jax.random.uniform(kw, (fan_in, fan_out), jnp.float32, -scale, scale)
        b = jax.random.uniform(kb, (fan_out,), jnp.float32, -scale, scale)
        return w, b

    params = []
    for head in range(2):                      # Q1, Q2
        k = keys[head * 6:(head + 1) * 6]
        w1, b1 = linear(k[0], k[1], d_in, hidden_size, 1.0 / (d_in ** 0.5))
        w2, b2 = linear(k[2], k[3], hidden_size, hidden_size,
                        1.0 / (hidden_size ** 0.5))
        w3, b3 = linear(k[4], k[5], hidden_size, 1, init_w)
        params += [w1, b1, w2, b2, w3, b3]
    return tuple(params)


def pack_params(raw_params, num_inputs, num_actions, hidden_size, *, fuse_w2=None):
    """Fuse both heads into one padded weight chain (bf16 weights, f32 biases)."""
    (w1_1, b1_1, w2_1, b2_1, w3_1, b3_1,
     w1_2, b1_2, w2_2, b2_2, w3_2, b3_2) = raw_params
    H = hidden_size
    d_in = num_inputs + num_actions
    if fuse_w2 is None:
        # Keep the block-diagonal fusion only while 2H fits a native MXU tile
        # (256 on v6e/v7x; at H<=64 it is also the 128-lane minimum, i.e. free).
        fuse_w2 = (2 * H <= 256)

    if fuse_w2:
        hp = _round_up(max(2 * H, LANES), LANES)   # fused hidden width
        off2 = H                                   # head-2 column offset
    else:
        half = _round_up(H, LANES)                 # per-head aligned half width
        hp = 2 * half
        off2 = half

    # Layer 1: one fused (d_in, hp) weight (single in-kernel matmul over [s|a]).
    w1 = jnp.zeros((d_in, hp), jnp.float32)
    w1 = w1.at[:, :H].set(w1_1).at[:, off2:off2 + H].set(w1_2)
    w1 = w1.astype(WEIGHT_DTYPE)

    # Biases for layers 1 & 2 packed into one (2, hp) f32 array (fewer tiny DMAs).
    b12 = jnp.zeros((2, hp), jnp.float32)
    b12 = b12.at[0, :H].set(b1_1).at[0, off2:off2 + H].set(b1_2)
    b12 = b12.at[1, :H].set(b2_1).at[1, off2:off2 + H].set(b2_2)

    # Layer 2: block-diagonal (hp, hp) for small H, else two (half, half) blocks.
    if fuse_w2:
        w2 = jnp.zeros((hp, hp), jnp.float32)
        w2 = w2.at[:H, :H].set(w2_1).at[off2:off2 + H, off2:off2 + H].set(w2_2)
    else:
        w2 = jnp.zeros((2, off2, off2), jnp.float32)
        w2 = w2.at[0, :H, :H].set(w2_1).at[1, :H, :H].set(w2_2)
    w2 = w2.astype(WEIGHT_DTYPE)

    # Layer 3: (hp, 128); head1 -> col 0, head2 -> col 1.
    w3 = jnp.zeros((hp, OUT_PAD), jnp.float32)
    w3 = w3.at[:H, 0].set(w3_1[:, 0]).at[off2:off2 + H, 1].set(w3_2[:, 0])
    w3 = w3.astype(WEIGHT_DTYPE)

    b3 = jnp.zeros((1, OUT_PAD), jnp.float32)
    b3 = b3.at[0, 0].set(b3_1[0]).at[0, 1].set(b3_2[0])

    return (w1, b12, w2, w3, b3)


# ----------------------------------------------------------------------------- reference
def reference_forward(state, action, raw_params):
    """Pure-JAX mirror of the PyTorch forward (same intentional bf16 casts)."""
    x = jnp.concatenate([state, action], axis=1).astype(jnp.float32)

    def head(w1, b1, w2, b2, w3, b3):
        h = jnp.dot(x.astype(WEIGHT_DTYPE), w1.astype(WEIGHT_DTYPE),
                    preferred_element_type=jnp.float32) + b1
        h = jnp.maximum(h, 0.0)
        h = jnp.dot(h.astype(WEIGHT_DTYPE), w2.astype(WEIGHT_DTYPE),
                    preferred_element_type=jnp.float32) + b2
        h = jnp.maximum(h, 0.0)
        return jnp.dot(h.astype(WEIGHT_DTYPE), w3.astype(WEIGHT_DTYPE),
                       preferred_element_type=jnp.float32) + b3

    q1 = head(*raw_params[:6])
    q2 = head(*raw_params[6:])
    return q1, q2


# ----------------------------------------------------------------------------- main
if __name__ == "__main__":
    key = jax.random.PRNGKey(0)
    k_state, k_action, k_params, k_state2, k_action2 = jax.random.split(key, 5)

    num_inputs = 16
    num_actions = 4

    # --- small config (fused block-diagonal W2 path, single grid step) --------
    batch, hidden_size = 8, 32
    state = jax.random.normal(k_state, (batch, num_inputs), jnp.float32)
    action = jax.random.normal(k_action, (batch, num_actions), jnp.float32)
    raw_params = init_raw_params(k_params, num_inputs, num_actions, hidden_size)
    packed_params = pack_params(raw_params, num_inputs, num_actions, hidden_size)

    q1, q2 = value_network_forward(state, action, packed_params)
    jax.block_until_ready((q1, q2))
    q1_ref, q2_ref = reference_forward(state, action, raw_params)
    assert q1.shape == (batch, 1) and q2.shape == (batch, 1)
    assert jnp.allclose(q1, q1_ref, atol=1e-2, rtol=1e-2)
    assert jnp.allclose(q2, q2_ref, atol=1e-2, rtol=1e-2)

    # --- multi-step "parallel" batch grid (2 grid steps) ----------------------
    batch2 = 32
    state2 = jax.random.normal(k_state2, (batch2, num_inputs), jnp.float32)
    action2 = jax.random.normal(k_action2, (batch2, num_actions), jnp.float32)
    q1, q2 = value_network_forward(state2, action2, packed_params)
    jax.block_until_ready((q1, q2))
    q1_ref, q2_ref = reference_forward(state2, action2, raw_params)
    assert jnp.allclose(q1, q1_ref, atol=1e-2, rtol=1e-2)
    assert jnp.allclose(q2, q2_ref, atol=1e-2, rtol=1e-2)

    # --- larger hidden size (exercises the per-head, unfused W2 path) ---------
    hidden2 = 192        # 2H > 256 -> two per-head matmuls on aligned halves
    raw2 = init_raw_params(k_params, num_inputs, num_actions, hidden2)
    packed2 = pack_params(raw2, num_inputs, num_actions, hidden2)
    q1, q2 = value_network_forward(state2, action2, packed2)
    jax.block_until_ready((q1, q2))
    q1_ref, q2_ref = reference_forward(state2, action2, raw2)
    assert jnp.allclose(q1, q1_ref, atol=1e-2, rtol=1e-2)
    assert jnp.allclose(q2, q2_ref, atol=1e-2, rtol=1e-2)

    print("KERNEL_OK")
</pallas_src>

<mosaic_0001>
module attributes {stable_mosaic.version = 11 : i64} {
  func.func @kernel(%arg0: i32, %arg1: memref<8x16xf32, #tpu.memory_space<vmem>>, %arg2: memref<8x4xf32, #tpu.memory_space<vmem>>, %arg3: memref<20x128xbf16, #tpu.memory_space<vmem>>, %arg4: memref<2x128xf32, #tpu.memory_space<vmem>>, %arg5: memref<128x128xbf16, #tpu.memory_space<vmem>>, %arg6: memref<128x128xbf16, #tpu.memory_space<vmem>>, %arg7: memref<1x128xf32, #tpu.memory_space<vmem>>, %arg8: memref<8x2xf32, #tpu.memory_space<vmem>>) attributes {dimension_semantics = [#tpu.dimension_semantics<parallel>], iteration_bounds = array<i64: 1>, scalar_prefetch = 0 : i64, scratch_operands = 0 : i64, tpu.core_type = #tpu.core_type<tc>, window_params = [{transform_indices = @transform_0, window_bounds = array<i64: 8, 16>}, {transform_indices = @transform_1, window_bounds = array<i64: 8, 4>}, {pipeline_mode = #tpu.pipeline_mode<synchronous>, transform_indices = @transform_2, window_bounds = array<i64: 20, 128>}, {pipeline_mode = #tpu.pipeline_mode<synchronous>, transform_indices = @transform_3, window_bounds = array<i64: 2, 128>}, {pipeline_mode = #tpu.pipeline_mode<synchronous>, transform_indices = @transform_4, window_bounds = array<i64: 128, 128>}, {pipeline_mode = #tpu.pipeline_mode<synchronous>, transform_indices = @transform_5, window_bounds = array<i64: 128, 128>}, {pipeline_mode = #tpu.pipeline_mode<synchronous>, transform_indices = @transform_6, window_bounds = array<i64: 1, 128>}, {transform_indices = @transform_7, window_bounds = array<i64: 8, 2>}]} {
    %c0 = arith.constant 0 : index
    %c0_0 = arith.constant 0 : index
    %0 = vector.load %arg1[%c0, %c0_0] : memref<8x16xf32, #tpu.memory_space<vmem>>, vector<8x16xf32>
    %c0_1 = arith.constant 0 : index
    %c0_2 = arith.constant 0 : index
    %1 = vector.load %arg2[%c0_1, %c0_2] : memref<8x4xf32, #tpu.memory_space<vmem>>, vector<8x4xf32>
    %2 = tpu.concatenate %0, %1 in 1 : vector<8x16xf32>, vector<8x4xf32> -> vector<8x20xf32>
    %3 = arith.truncf %2 : vector<8x20xf32> to vector<8x20xbf16>
    %c0_3 = arith.constant 0 : index
    %c0_4 = arith.constant 0 : index
    %4 = vector.load %arg3[%c0_3, %c0_4] : memref<20x128xbf16, #tpu.memory_space<vmem>>, vector<20x128xbf16>
    %cst = arith.constant dense<0.000000e+00> : vector<8x128xf32>
    %5 = tpu.matmul %3, %4, %cst {dimension_numbers = #tpu.dot_dimension_numbers<[1], [0], [0], [1], [0, 0, 1, 1], [], []>} : vector<8x20xbf16>, vector<20x128xbf16>, vector<8x128xf32> -> vector<8x128xf32>
    %c0_5 = arith.constant 0 : index
    %c0_6 = arith.constant 0 : index
    %6 = vector.load %arg4[%c0_5, %c0_6] : memref<2x128xf32, #tpu.memory_space<vmem>>, vector<1x128xf32>
    %7 = vector.broadcast %6 : vector<1x128xf32> to vector<8x128xf32>
    %8 = arith.addf %5, %7 : vector<8x128xf32>
    %cst_7 = arith.constant 0.000000e+00 : f32
    %9 = vector.broadcast %cst_7 : f32 to vector<8x128xf32>
    %10 = arith.maximumf %8, %9 : vector<8x128xf32>
    %11 = arith.truncf %10 : vector<8x128xf32> to vector<8x128xbf16>
    %c0_8 = arith.constant 0 : index
    %c0_9 = arith.constant 0 : index
    %12 = vector.load %arg5[%c0_8, %c0_9] : memref<128x128xbf16, #tpu.memory_space<vmem>>, vector<128x128xbf16>
    %cst_10 = arith.constant dense<0.000000e+00> : vector<8x128xf32>
    %13 = tpu.matmul %11, %12, %cst_10 {dimension_numbers = #tpu.dot_dimension_numbers<[1], [0], [0], [1], [0, 0, 1, 1], [], []>} : vector<8x128xbf16>, vector<128x128xbf16>, vector<8x128xf32> -> vector<8x128xf32>
    %c1 = arith.constant 1 : index
    %c0_11 = arith.constant 0 : index
    %14 = vector.load %arg4[%c1, %c0_11] : memref<2x128xf32, #tpu.memory_space<vmem>>, vector<1x128xf32>
    %15 = vector.broadcast %14 : vector<1x128xf32> to vector<8x128xf32>
    %16 = arith.addf %13, %15 : vector<8x128xf32>
    %cst_12 = arith.constant 0.000000e+00 : f32
    %17 = vector.broadcast %cst_12 : f32 to vector<8x128xf32>
    %18 = arith.maximumf %16, %17 : vector<8x128xf32>
    %19 = arith.truncf %18 : vector<8x128xf32> to vector<8x128xbf16>
    %c0_13 = arith.constant 0 : index
    %c0_14 = arith.constant 0 : index
    %20 = vector.load %arg6[%c0_13, %c0_14] : memref<128x128xbf16, #tpu.memory_space<vmem>>, vector<128x128xbf16>
    %cst_15 = arith.constant dense<0.000000e+00> : vector<8x128xf32>
    %21 = tpu.matmul %19, %20, %cst_15 {dimension_numbers = #tpu.dot_dimension_numbers<[1], [0], [0], [1], [0, 0, 1, 1], [], []>} : vector<8x128xbf16>, vector<128x128xbf16>, vector<8x128xf32> -> vector<8x128xf32>
    %c0_16 = arith.constant 0 : index
    %c0_17 = arith.constant 0 : index
    %22 = vector.load %arg7[%c0_16, %c0_17] : memref<1x128xf32, #tpu.memory_space<vmem>>, vector<1x128xf32>
    %23 = vector.broadcast %22 : vector<1x128xf32> to vector<8x128xf32>
    %24 = arith.addf %21, %23 : vector<8x128xf32>
    %25 = vector.extract_strided_slice %24 {offsets = [0, 0], sizes = [8, 2], strides = [1, 1]} : vector<8x128xf32> to vector<8x2xf32>
    %c0_18 = arith.constant 0 : index
    %c0_19 = arith.constant 0 : index
    %26 = vector.load %arg8[%c0_18, %c0_19] : memref<8x2xf32, #tpu.memory_space<vmem>>, vector<8x2xf32>
    tpu.vector_store %arg8[%c0_18, %c0_19], %25 {strides = array<i32>} : memref<8x2xf32, #tpu.memory_space<vmem>>, vector<8x2xf32>,
    return
  }
  func.func @transform_0(%arg0: i32) -> (i32, i32) {
    %c0_i32 = arith.constant 0 : i32
    %c0_i32_0 = arith.constant 0 : i32
    return %arg0, %c0_i32 : i32, i32
  }
  func.func @transform_1(%arg0: i32) -> (i32, i32) {
    %c0_i32 = arith.constant 0 : i32
    %c0_i32_0 = arith.constant 0 : i32
    return %arg0, %c0_i32 : i32, i32
  }
  func.func @transform_2(%arg0: i32) -> (i32, i32) {
    %c0_i32 = arith.constant 0 : i32
    %c0_i32_0 = arith.constant 0 : i32
    %c0_i32_1 = arith.constant 0 : i32
    return %c0_i32, %c0_i32_0 : i32, i32
  }
  func.func @transform_3(%arg0: i32) -> (i32, i32) {
    %c0_i32 = arith.constant 0 : i32
    %c0_i32_0 = arith.constant 0 : i32
    %c0_i32_1 = arith.constant 0 : i32
    return %c0_i32, %c0_i32_0 : i32, i32
  }
  func.func @transform_4(%arg0: i32) -> (i32, i32) {
    %c0_i32 = arith.constant 0 : i32
    %c0_i32_0 = arith.constant 0 : i32
    %c0_i32_1 = arith.constant 0 : i32
    return %c0_i32, %c0_i32_0 : i32, i32
  }
  func.func @transform_5(%arg0: i32) -> (i32, i32) {
    %c0_i32 = arith.constant 0 : i32
    %c0_i32_0 = arith.constant 0 : i32
    %c0_i32_1 = arith.constant 0 : i32
    return %c0_i32, %c0_i32_0 : i32, i32
  }
  func.func @transform_6(%arg0: i32) -> (i32, i32) {
    %c0_i32 = arith.constant 0 : i32
    %c0_i32_0 = arith.constant 0 : i32
    %c0_i32_1 = arith.constant 0 : i32
    return %c0_i32, %c0_i32_0 : i32, i32
  }
  func.func @transform_7(%arg0: i32) -> (i32, i32) {
    %c0_i32 = arith.constant 0 : i32
    %c0_i32_0 = arith.constant 0 : i32
    return %arg0, %c0_i32 : i32, i32
  }
}

module attributes {stable_mosaic.version = 11 : i64} {
  func.func @kernel(%arg0: i32, %arg1: memref<8x16xf32, #tpu.memory_space<vmem>>, %arg2: memref<8x4xf32, #tpu.memory_space<vmem>>, %arg3: memref<20x128xbf16, #tpu.memory_space<vmem>>, %arg4: memref<2x128xf32, #tpu.memory_space<vmem>>, %arg5: memref<128x128xbf16, #tpu.memory_space<vmem>>, %arg6: memref<128x128xbf16, #tpu.memory_space<vmem>>, %arg7: memref<1x128xf32, #tpu.memory_space<vmem>>, %arg8: memref<8x2xf32, #tpu.memory_space<vmem>>) attributes {dimension_semantics = [#tpu.dimension_semantics<parallel>], iteration_bounds = array<i64: 1>, scalar_prefetch = 0 : i64, scratch_operands = 0 : i64, tpu.core_type = #tpu.core_type<tc>, window_params = [{transform_indices = @transform_0, window_bounds = array<i64: 8, 16>}, {transform_indices = @transform_1, window_bounds = array<i64: 8, 4>}, {pipeline_mode = #tpu.pipeline_mode<synchronous>, transform_indices = @transform_2, window_bounds = array<i64: 20, 128>}, {pipeline_mode = #tpu.pipeline_mode<synchronous>, transform_indices = @transform_3, window_bounds = array<i64: 2, 128>}, {pipeline_mode = #tpu.pipeline_mode<synchronous>, transform_indices = @transform_4, window_bounds = array<i64: 128, 128>}, {pipeline_mode = #tpu.pipeline_mode<synchronous>, transform_indices = @transform_5, window_bounds = array<i64: 128, 128>}, {pipeline_mode = #tpu.pipeline_mode<synchronous>, transform_indices = @transform_6, window_bounds = array<i64: 1, 128>}, {transform_indices = @transform_7, window_bounds = array<i64: 8, 2>}]} {
    %c0 = arith.constant 0 : index
    %c0_0 = arith.constant 0 : index
    %0 = vector.load %arg1[%c0, %c0_0] : memref<8x16xf32, #tpu.memory_space<vmem>>, vector<8x16xf32>
    %c0_1 = arith.constant 0 : index
    %c0_2 = arith.constant 0 : index
    %1 = vector.load %arg2[%c0_1, %c0_2] : memref<8x4xf32, #tpu.memory_space<vmem>>, vector<8x4xf32>
    %2 = tpu.concatenate %0, %1 in 1 : vector<8x16xf32>, vector<8x4xf32> -> vector<8x20xf32>
    %3 = arith.truncf %2 : vector<8x20xf32> to vector<8x20xbf16>
    %c0_3 = arith.constant 0 : index
    %c0_4 = arith.constant 0 : index
    %4 = vector.load %arg3[%c0_3, %c0_4] : memref<20x128xbf16, #tpu.memory_space<vmem>>, vector<20x128xbf16>
    %cst = arith.constant dense<0.000000e+00> : vector<8x128xf32>
    %5 = tpu.matmul %3, %4, %cst {dimension_numbers = #tpu.dot_dimension_numbers<[1], [0], [0], [1], [0, 0, 1, 1], [], []>} : vector<8x20xbf16>, vector<20x128xbf16>, vector<8x128xf32> -> vector<8x128xf32>
    %c0_5 = arith.constant 0 : index
    %c0_6 = arith.constant 0 : index
    %6 = vector.load %arg4[%c0_5, %c0_6] : memref<2x128xf32, #tpu.memory_space<vmem>>, vector<1x128xf32>
    %7 = vector.broadcast %6 : vector<1x128xf32> to vector<8x128xf32>
    %8 = arith.addf %5, %7 : vector<8x128xf32>
    %cst_7 = arith.constant 0.000000e+00 : f32
    %9 = vector.broadcast %cst_7 : f32 to vector<8x128xf32>
    %10 = arith.maximumf %8, %9 : vector<8x128xf32>
    %11 = arith.truncf %10 : vector<8x128xf32> to vector<8x128xbf16>
    %c0_8 = arith.constant 0 : index
    %c0_9 = arith.constant 0 : index
    %12 = vector.load %arg5[%c0_8, %c0_9] : memref<128x128xbf16, #tpu.memory_space<vmem>>, vector<128x128xbf16>
    %cst_10 = arith.constant dense<0.000000e+00> : vector<8x128xf32>
    %13 = tpu.matmul %11, %12, %cst_10 {dimension_numbers = #tpu.dot_dimension_numbers<[1], [0], [0], [1], [0, 0, 1, 1], [], []>} : vector<8x128xbf16>, vector<128x128xbf16>, vector<8x128xf32> -> vector<8x128xf32>
    %c1 = arith.constant 1 : index
    %c0_11 = arith.constant 0 : index
    %14 = vector.load %arg4[%c1, %c0_11] : memref<2x128xf32, #tpu.memory_space<vmem>>, vector<1x128xf32>
    %15 = vector.broadcast %14 : vector<1x128xf32> to vector<8x128xf32>
    %16 = arith.addf %13, %15 : vector<8x128xf32>
    %cst_12 = arith.constant 0.000000e+00 : f32
    %17 = vector.broadcast %cst_12 : f32 to vector<8x128xf32>
    %18 = arith.maximumf %16, %17 : vector<8x128xf32>
    %19 = arith.truncf %18 : vector<8x128xf32> to vector<8x128xbf16>
    %c0_13 = arith.constant 0 : index
    %c0_14 = arith.constant 0 : index
    %20 = vector.load %arg6[%c0_13, %c0_14] : memref<128x128xbf16, #tpu.memory_space<vmem>>, vector<128x128xbf16>
    %cst_15 = arith.constant dense<0.000000e+00> : vector<8x128xf32>
    %21 = tpu.matmul %19, %20, %cst_15 {dimension_numbers = #tpu.dot_dimension_numbers<[1], [0], [0], [1], [0, 0, 1, 1], [], []>} : vector<8x128xbf16>, vector<128x128xbf16>, vector<8x128xf32> -> vector<8x128xf32>
    %c0_16 = arith.constant 0 : index
    %c0_17 = arith.constant 0 : index
    %22 = vector.load %arg7[%c0_16, %c0_17] : memref<1x128xf32, #tpu.memory_space<vmem>>, vector<1x128xf32>
    %23 = vector.broadcast %22 : vector<1x128xf32> to vector<8x128xf32>
    %24 = arith.addf %21, %23 : vector<8x128xf32>
    %25 = vector.extract_strided_slice %24 {offsets = [0, 0], sizes = [8, 2], strides = [1, 1]} : vector<8x128xf32> to vector<8x2xf32>
    %c0_18 = arith.constant 0 : index
    %c0_19 = arith.constant 0 : index
    %26 = vector.load %arg8[%c0_18, %c0_19] : memref<8x2xf32, #tpu.memory_space<vmem>>, vector<8x2xf32>
    tpu.vector_store %arg8[%c0_18, %c0_19], %25 {strides = array<i32>} : memref<8x2xf32, #tpu.memory_space<vmem>>, vector<8x2xf32>,
    return
  }
  func.func @transform_0(%arg0: i32) -> (i32, i32) {
    %c0_i32 = arith.constant 0 : i32
    %c0_i32_0 = arith.constant 0 : i32
    return %arg0, %c0_i32 : i32, i32
  }
  func.func @transform_1(%arg0: i32) -> (i32, i32) {
    %c0_i32 = arith.constant 0 : i32
    %c0_i32_0 = arith.constant 0 : i32
    return %arg0, %c0_i32 : i32, i32
  }
  func.func @transform_2(%arg0: i32) -> (i32, i32) {
    %c0_i32 = arith.constant 0 : i32
    %c0_i32_0 = arith.constant 0 : i32
    %c0_i32_1 = arith.constant 0 : i32
    return %c0_i32, %c0_i32_0 : i32, i32
  }
  func.func @transform_3(%arg0: i32) -> (i32, i32) {
    %c0_i32 = arith.constant 0 : i32
    %c0_i32_0 = arith.constant 0 : i32
    %c0_i32_1 = arith.constant 0 : i32
    return %c0_i32, %c0_i32_0 : i32, i32
  }
  func.func @transform_4(%arg0: i32) -> (i32, i32) {
    %c0_i32 = arith.constant 0 : i32
    %c0_i32_0 = arith.constant 0 : i32
    %c0_i32_1 = arith.constant 0 : i32
    return %c0_i32, %c0_i32_0 : i32, i32
  }
  func.func @transform_5(%arg0: i32) -> (i32, i32) {
    %c0_i32 = arith.constant 0 : i32
    %c0_i32_0 = arith.constant 0 : i32
    %c0_i32_1 = arith.constant 0 : i32
    return %c0_i32, %c0_i32_0 : i32, i32
  }
  func.func @transform_6(%arg0: i32) -> (i32, i32) {
    %c0_i32 = arith.constant 0 : i32
    %c0_i32_0 = arith.constant 0 : i32
    %c0_i32_1 = arith.constant 0 : i32
    return %c0_i32, %c0_i32_0 : i32, i32
  }
  func.func @transform_7(%arg0: i32) -> (i32, i32) {
    %c0_i32 = arith.constant 0 : i32
    %c0_i32_0 = arith.constant 0 : i32
    return %arg0, %c0_i32 : i32, i32
  }
}

</mosaic_0001>

<bundles_post_ra>
// kernel: tpu_custom_call.1
= control target key start
LH: loop header
LB: loop body
LE: loop exit
PB: predicated region body
PF: predicated region fallthrough
CT: control target
= control target key end

     0   :  { %12 = vsyncpa [#allocation3], 0  ;;  %s535_s0 = inlined_call_operand.hbm [shape: f32[8,16], index: 0, kind: input, shape index: {}]   ;;  %s536_s1 = inlined_call_operand.vmem [shape: f32[8,4], index: 1, kind: input, shape index: {}]   ;;  %s537_s2 = inlined_call_operand.vmem [shape: bf16[20,128], index: 2, kind: input, shape index: {}]   ;;  %s538_s3 = inlined_call_operand.vmem [shape: f32[2,128], index: 3, kind: input, shape index: {}]   ;;  %s539_s4 = inlined_call_operand.hbm [shape: bf16[128,128], index: 4, kind: input, shape index: {}]   ;;  %s540_s5 = inlined_call_operand.hbm [shape: bf16[128,128], index: 5, kind: input, shape index: {}]   ;;  %s541_s6 = inlined_call_operand.vmem [shape: f32[1,128], index: 6, kind: input, shape index: {}]   ;;  %s542_s7 = inlined_call_operand.vmem [shape: f32[8,2], index: 7, kind: output, shape index: {}]  }
   0x1   :  { %13 = vsyncpa [#allocation5], 0  ;;  %s35_s26 = sshll.u32 %s539_s4, 4  ;;  %s459_s27 = smov [#allocation4]   ;;  %s36_s26 = int_to_ptr.hbm [resolvable:$true] %s35_s26 }
   0x2   :  { %s37_s28 = sshll.u32 %s459_s27, 4  ;;  %s19_s8 = sshll.u32 %s535_s0, 4  ;;  %s38_s28 = int_to_ptr.vmem [resolvable:$true] %s37_s28  ;;  %s20_s8 = int_to_ptr.hbm [resolvable:$true] %s19_s8 }
   0x3   :  { %s460_s9 = smov 64   ;;  %s461_s10 = smov 4  }
   0x4   :  { %43 = dma.hbm_to_vmem [thread:$0]  %s36_s26, 1024, %s38_s28, [#allocation5], %s460_s9, %s460_s9, %s461_s10  }
   0x5   :  { %s462_s11 = smov [#allocation2]   ;;  %s48_s15 = sshll.u32 %s540_s5, 4  ;;  %s49_s15 = int_to_ptr.hbm [resolvable:$true] %s48_s15 }
   0x6   :  { %s21_s12 = sshll.u32 %s462_s11, 4  ;;  %s463_s4 = smov [#allocation6]   ;;  %s22_s12 = int_to_ptr.vmem [resolvable:$true] %s21_s12 }
   0x7   :  { %24 = dma.hbm_to_vmem [thread:$0]  %s20_s8, 128, %s22_s12, [#allocation3]  }
   0x8   :  { %s50_s16 = sshll.u32 %s463_s4, 4  ;;  %s51_s16 = int_to_ptr.vmem [resolvable:$true] %s50_s16 }
   0x9   :  { %56 = dma.hbm_to_vmem [thread:$0]  %s49_s15, 1024, %s51_s16, [#allocation5], %s460_s9, %s460_s9, %s461_s10  }
   0xa   :  { %455 = dma.done.wait [#allocation3], 128  }
   0xb   :  { %456 = vsyncadd [#allocation3], 4294967168 }
   0xc   :  { %457 = dma.done.wait [#allocation5], 2048  }
   0xd   :  { %458 = vsyncadd [#allocation5], 4294965248  ;;  %v73_v0 = vld [vmem:[%s536_s1] sm:$0xff]  ;;  %v83_v1 = vld [vmem:[%s537_s2 + $0x8] sm:$0x3]  ;;  %s464_s5 = smov 16  }
   0xe   :  { %75 = vrot.lane.b32.xlu0 %v73_v0, %s464_s5  ;;  %v91_v2 = vunpack.c.l.b16 %v83_v1  ;;  %vm99_vm0 = vcmask 1041408   ;;  %v357_v5 = vld [vmem:[%s537_s2] sm:$0xff]  ;;  %v364_v7 = vld [vmem:[#allocation4 + $0x30] sm:$0xff]  ;;  %v363_v8 = vld [vmem:[#allocation4 + $0x28] sm:$0xff]  ;;  %vm78_vm1 = vcmask 130048   ;;  %vm95_vm2 = vcmask 162816  }
   0xf   :  { %v365_v6 = vld [vmem:[#allocation4 + $0x38] sm:$0xff]  ;;  %v362_v9 = vld [vmem:[#allocation4 + $0x20] sm:$0xff]  ;;  %v360_v11 = vld [vmem:[#allocation4 + $0x10] sm:$0xff]  ;;  %vm280_vm3 = vcmask 15360  }
  0x10   :  { %v93_v3 = vpack.c.b16 %v91_v2, %v91_v2  ;;  %184 = vmatpush.bf16.msra.mxu1 %v365_v6  ;;  %v361_v10 = vld [vmem:[#allocation4 + $0x18] sm:$0xff]  ;;  %v359_v16 = vld [vmem:[#allocation4 + $0x8] sm:$0xff]  ;;  %v358_v17 = vld [vmem:[#allocation4] sm:$0xff] }
  0x11   :  { %v72_v12 = vld [vmem:[#allocation2] sm:$0xff]  ;;  %v372_v19 = vld [vmem:[#allocation6 + $0x30] sm:$0xff]  ;;  %v371_v20 = vld [vmem:[#allocation6 + $0x28] sm:$0xff] }
  0x12   :  { %v101_v4 = vsel %vm99_vm0, %v93_v3, 0  ;;  %v373_v18 = vld [vmem:[#allocation6 + $0x38] sm:$0xff]  ;;  %v370_v21 = vld [vmem:[#allocation6 + $0x20] sm:$0xff]  ;;  %v368_v23 = vld [vmem:[#allocation6 + $0x10] sm:$0xff] }
  0x13   :  { %109 = vmatpush.bf16.msra.mxu0 %v101_v4  ;;  %267 = vmatpush.bf16.msra.mxu2 %v373_v18  ;;  %v369_v22 = vld [vmem:[#allocation6 + $0x18] sm:$0xff]  ;;  %v367_v30 = vld [vmem:[#allocation6 + $0x8] sm:$0xff]  ;;  %v366_v31 = vld [vmem:[#allocation6] sm:$0xff] }
  0x14   :  { %185 = vmatpush.bf16.msra.mxu1 %v364_v7  ;;  %v380_v24 = vld [vmem:[%s538_s3] ss:$0 sm:$0xff]  ;;  %v381_v32 = vld [vmem:[%s538_s3 + $0x1] ss:$0 sm:$0xff] }
  0x15   :  { %v382_v38 = vld [vmem:[%s541_s6] ss:$0 sm:$0xff] }
  0x17   :  { %110 = vmatpush.bf16.msra.mxu0 %v357_v5  ;;  %268 = vmatpush.bf16.msra.mxu2 %v372_v19 }
  0x18   :  { %186 = vmatpush.bf16.msra.mxu1 %v363_v8 }
  0x1b   :  { %269 = vmatpush.bf16.msra.mxu2 %v371_v20 }
  0x1c   :  { %187 = vmatpush.bf16.msra.mxu1 %v362_v9 }
  0x1f   :  { %270 = vmatpush.bf16.msra.mxu2 %v370_v21 }
  0x20   :  { %188 = vmatpush.bf16.msra.mxu1 %v361_v10 }
  0x23   :  { %271 = vmatpush.bf16.msra.mxu2 %v369_v22 }
  0x24   :  { %189 = vmatpush.bf16.msra.mxu1 %v360_v11 }
  0x27   :  { %272 = vmatpush.bf16.msra.mxu2 %v368_v23 }
  0x28   :  { %190 = vmatpush.bf16.msra.mxu1 %v359_v16 }
  0x2b   :  { %273 = vmatpush.bf16.msra.mxu2 %v367_v30 }
  0x2c   :  { %191 = vmatpush.bf16.msra.mxu1 %v358_v17 }
  0x2f   :  { %274 = vmatpush.bf16.msra.mxu2 %v366_v31 }
  0x80   :  { %v76_v13 = vpop.permute.xlu0 %75 }
  0x81   :  { %v79_v14 = vsel %vm78_vm1, %v72_v12, %v76_v13 }
  0x82   :  { %v80_v15 = vpack.c.bf16 %v79_v14, %v79_v14 }
  0x84   :  { %292 = vmatmul.msk.bf16.vlgmr.msra.gmra.mxu0 %vm95_vm2, %v80_v15 }
 0x101   :  { %v112_v25 = vpop.f32.mrf.mxu0 }
 0x102   :  { %v113_v26 = vadd.f32 %v380_v24, %v112_v25 }
 0x104   :  { %v116_v27 = vmax.f32 %v113_v26, 0.0 }
 0x106   :  { %v117_v28 = vpack.c.bf16 %v116_v27, %v116_v27 }
 0x108   :  { %192 = vmatmul.bf16.vlgmr.msra.gmra.mxu1 %v117_v28 }
 0x109   :  { %v114_v29 = vpop.f32.mrf.mxu0 }
 0x185   :  { %v193_v33 = vpop.f32.mrf.mxu1 }
 0x186   :  { %v194_v34 = vadd.f32 %v381_v32, %v193_v33 }
 0x188   :  { %v197_v35 = vmax.f32 %v194_v34, 0.0 }
 0x18a   :  { %v198_v36 = vpack.c.bf16 %v197_v35, %v197_v35 }
 0x18c   :  { %275 = vmatmul.bf16.vlgmr.msra.gmra.mxu2 %v198_v36 }
 0x18d   :  { %v195_v37 = vpop.f32.mrf.mxu1 }
 0x20f   :  { %v276_v39 = vpop.f32.mrf.mxu2 }
 0x210   :  { %v277_v40 = vadd.f32 %v382_v38, %v276_v39 }
 0x212   :  { %281 = vst.msk [vmem:[%s542_s7] sm:$0xff] %vm280_vm3, %v277_v40 }
 0x217   :  { %v278_v41 = vpop.f32.mrf.mxu2 }
 0x218   :  { %286 = vsyncpa [#allocation3], 1 }
 0x219   :  { %287 = vsyncpa [#allocation5], 1 }

// kernel: tpu_custom_call.1
= control target key start
LH: loop header
LB: loop body
LE: loop exit
PB: predicated region body
PF: predicated region fallthrough
CT: control target
= control target key end

     0   :  { %12 = vsyncpa [#allocation3], 0  ;;  %s535_s0 = inlined_call_operand.hbm [shape: f32[8,16], index: 0, kind: input, shape index: {}]   ;;  %s536_s1 = inlined_call_operand.vmem [shape: f32[8,4], index: 1, kind: input, shape index: {}]   ;;  %s537_s2 = inlined_call_operand.vmem [shape: bf16[20,128], index: 2, kind: input, shape index: {}]   ;;  %s538_s3 = inlined_call_operand.vmem [shape: f32[2,128], index: 3, kind: input, shape index: {}]   ;;  %s539_s4 = inlined_call_operand.hbm [shape: bf16[128,128], index: 4, kind: input, shape index: {}]   ;;  %s540_s5 = inlined_call_operand.hbm [shape: bf16[128,128], index: 5, kind: input, shape index: {}]   ;;  %s541_s6 = inlined_call_operand.vmem [shape: f32[1,128], index: 6, kind: input, shape index: {}]   ;;  %s542_s7 = inlined_call_operand.vmem [shape: f32[8,2], index: 7, kind: output, shape index: {}]  }
   0x1   :  { %13 = vsyncpa [#allocation5], 0  ;;  %s35_s26 = sshll.u32 %s539_s4, 4  ;;  %s459_s27 = smov [#allocation4]   ;;  %s36_s26 = int_to_ptr.hbm [resolvable:$true] %s35_s26 }
   0x2   :  { %s37_s28 = sshll.u32 %s459_s27, 4  ;;  %s19_s8 = sshll.u32 %s535_s0, 4  ;;  %s38_s28 = int_to_ptr.vmem [resolvable:$true] %s37_s28  ;;  %s20_s8 = int_to_ptr.hbm [resolvable:$true] %s19_s8 }
   0x3   :  { %s460_s9 = smov 64   ;;  %s461_s10 = smov 4  }
   0x4   :  { %43 = dma.hbm_to_vmem [thread:$0]  %s36_s26, 1024, %s38_s28, [#allocation5], %s460_s9, %s460_s9, %s461_s10  }
   0x5   :  { %s462_s11 = smov [#allocation2]   ;;  %s48_s15 = sshll.u32 %s540_s5, 4  ;;  %s49_s15 = int_to_ptr.hbm [resolvable:$true] %s48_s15 }
   0x6   :  { %s21_s12 = sshll.u32 %s462_s11, 4  ;;  %s463_s4 = smov [#allocation6]   ;;  %s22_s12 = int_to_ptr.vmem [resolvable:$true] %s21_s12 }
   0x7   :  { %24 = dma.hbm_to_vmem [thread:$0]  %s20_s8, 128, %s22_s12, [#allocation3]  }
   0x8   :  { %s50_s16 = sshll.u32 %s463_s4, 4  ;;  %s51_s16 = int_to_ptr.vmem [resolvable:$true] %s50_s16 }
   0x9   :  { %56 = dma.hbm_to_vmem [thread:$0]  %s49_s15, 1024, %s51_s16, [#allocation5], %s460_s9, %s460_s9, %s461_s10  }
   0xa   :  { %455 = dma.done.wait [#allocation3], 128  }
   0xb   :  { %456 = vsyncadd [#allocation3], 4294967168 }
   0xc   :  { %457 = dma.done.wait [#allocation5], 2048  }
   0xd   :  { %458 = vsyncadd [#allocation5], 4294965248  ;;  %v73_v0 = vld [vmem:[%s536_s1] sm:$0xff]  ;;  %v83_v1 = vld [vmem:[%s537_s2 + $0x8] sm:$0x3]  ;;  %s464_s5 = smov 16  }
   0xe   :  { %75 = vrot.lane.b32.xlu0 %v73_v0, %s464_s5  ;;  %v91_v2 = vunpack.c.l.b16 %v83_v1  ;;  %vm99_vm0 = vcmask 1041408   ;;  %v357_v5 = vld [vmem:[%s537_s2] sm:$0xff]  ;;  %v364_v7 = vld [vmem:[#allocation4 + $0x30] sm:$0xff]  ;;  %v363_v8 = vld [vmem:[#allocation4 + $0x28] sm:$0xff]  ;;  %vm78_vm1 = vcmask 130048   ;;  %vm95_vm2 = vcmask 162816  }
   0xf   :  { %v365_v6 = vld [vmem:[#allocation4 + $0x38] sm:$0xff]  ;;  %v362_v9 = vld [vmem:[#allocation4 + $0x20] sm:$0xff]  ;;  %v360_v11 = vld [vmem:[#allocation4 + $0x10] sm:$0xff]  ;;  %vm280_vm3 = vcmask 15360  }
  0x10   :  { %v93_v3 = vpack.c.b16 %v91_v2, %v91_v2  ;;  %184 = vmatpush.bf16.msra.mxu1 %v365_v6  ;;  %v361_v10 = vld [vmem:[#allocation4 + $0x18] sm:$0xff]  ;;  %v359_v16 = vld [vmem:[#allocation4 + $0x8] sm:$0xff]  ;;  %v358_v17 = vld [vmem:[#allocation4] sm:$0xff] }
  0x11   :  { %v72_v12 = vld [vmem:[#allocation2] sm:$0xff]  ;;  %v372_v19 = vld [vmem:[#allocation6 + $0x30] sm:$0xff]  ;;  %v371_v20 = vld [vmem:[#allocation6 + $0x28] sm:$0xff] }
  0x12   :  { %v101_v4 = vsel %vm99_vm0, %v93_v3, 0  ;;  %v373_v18 = vld [vmem:[#allocation6 + $0x38] sm:$0xff]  ;;  %v370_v21 = vld [vmem:[#allocation6 + $0x20] sm:$0xff]  ;;  %v368_v23 = vld [vmem:[#allocation6 + $0x10] sm:$0xff] }
  0x13   :  { %109 = vmatpush.bf16.msra.mxu0 %v101_v4  ;;  %267 = vmatpush.bf16.msra.mxu2 %v373_v18  ;;  %v369_v22 = vld [vmem:[#allocation6 + $0x18] sm:$0xff]  ;;  %v367_v30 = vld [vmem:[#allocation6 + $0x8] sm:$0xff]  ;;  %v366_v31 = vld [vmem:[#allocation6] sm:$0xff] }
  0x14   :  { %185 = vmatpush.bf16.msra.mxu1 %v364_v7  ;;  %v380_v24 = vld [vmem:[%s538_s3] ss:$0 sm:$0xff]  ;;  %v381_v32 = vld [vmem:[%s538_s3 + $0x1] ss:$0 sm:$0xff] }
  0x15   :  { %v382_v38 = vld [vmem:[%s541_s6] ss:$0 sm:$0xff] }
  0x17   :  { %110 = vmatpush.bf16.msra.mxu0 %v357_v5  ;;  %268 = vmatpush.bf16.msra.mxu2 %v372_v19 }
  0x18   :  { %186 = vmatpush.bf16.msra.mxu1 %v363_v8 }
  0x1b   :  { %269 = vmatpush.bf16.msra.mxu2 %v371_v20 }
  0x1c   :  { %187 = vmatpush.bf16.msra.mxu1 %v362_v9 }
  0x1f   :  { %270 = vmatpush.bf16.msra.mxu2 %v370_v21 }
  0x20   :  { %188 = vmatpush.bf16.msra.mxu1 %v361_v10 }
  0x23   :  { %271 = vmatpush.bf16.msra.mxu2 %v369_v22 }
  0x24   :  { %189 = vmatpush.bf16.msra.mxu1 %v360_v11 }
  0x27   :  { %272 = vmatpush.bf16.msra.mxu2 %v368_v23 }
  0x28   :  { %190 = vmatpush.bf16.msra.mxu1 %v359_v16 }
  0x2b   :  { %273 = vmatpush.bf16.msra.mxu2 %v367_v30 }
  0x2c   :  { %191 = vmatpush.bf16.msra.mxu1 %v358_v17 }
  0x2f   :  { %274 = vmatpush.bf16.msra.mxu2 %v366_v31 }
  0x80   :  { %v76_v13 = vpop.permute.xlu0 %75 }
  0x81   :  { %v79_v14 = vsel %vm78_vm1, %v72_v12, %v76_v13 }
  0x82   :  { %v80_v15 = vpack.c.bf16 %v79_v14, %v79_v14 }
  0x84   :  { %292 = vmatmul.msk.bf16.vlgmr.msra.gmra.mxu0 %vm95_vm2, %v80_v15 }
 0x101   :  { %v112_v25 = vpop.f32.mrf.mxu0 }
 0x102   :  { %v113_v26 = vadd.f32 %v380_v24, %v112_v25 }
 0x104   :  { %v116_v27 = vmax.f32 %v113_v26, 0.0 }
 0x106   :  { %v117_v28 = vpack.c.bf16 %v116_v27, %v116_v27 }
 0x108   :  { %192 = vmatmul.bf16.vlgmr.msra.gmra.mxu1 %v117_v28 }
 0x109   :  { %v114_v29 = vpop.f32.mrf.mxu0 }
 0x185   :  { %v193_v33 = vpop.f32.mrf.mxu1 }
 0x186   :  { %v194_v34 = vadd.f32 %v381_v32, %v193_v33 }
 0x188   :  { %v197_v35 = vmax.f32 %v194_v34, 0.0 }
 0x18a   :  { %v198_v36 = vpack.c.bf16 %v197_v35, %v197_v35 }
 0x18c   :  { %275 = vmatmul.bf16.vlgmr.msra.gmra.mxu2 %v198_v36 }
 0x18d   :  { %v195_v37 = vpop.f32.mrf.mxu1 }
 0x20f   :  { %v276_v39 = vpop.f32.mrf.mxu2 }
 0x210   :  { %v277_v40 = vadd.f32 %v382_v38, %v276_v39 }
 0x212   :  { %281 = vst.msk [vmem:[%s542_s7] sm:$0xff] %vm280_vm3, %v277_v40 }
 0x217   :  { %v278_v41 = vpop.f32.mrf.mxu2 }
 0x218   :  { %286 = vsyncpa [#allocation3], 1 }
 0x219   :  { %287 = vsyncpa [#allocation5], 1 }

</bundles_post_ra>
